<compile_context>
chip_gen: v6e
topology: v6e:2x2x1
jax: 0.10.0
libtpu: 0.0.40
codegen_flags: <defaults>
</compile_context>

<pallas_src>
import math

import jax
import jax.numpy as jnp
from jax.experimental import pallas as pl
from jax.experimental.pallas import tpu as pltpu


def _round_up(x, m):
    return ((x + m - 1) // m) * m


def _sinc_right_kernel(band_ref, t_ref, out_ref):
    # band_ref: (F_pad, 1)  f32 VMEM
    # t_ref   : (1, N_pad)  f32 VMEM
    # out_ref : (F_pad, N_pad) f32 VMEM  (lane-dense: N_pad % 128 == 0)
    band = band_ref[...]                     # (F_pad, 1)
    t = t_ref[...]                           # (1, N_pad)
    x = (2.0 * math.pi) * band * t           # broadcast -> (F_pad, N_pad)
    out_ref[...] = jnp.sin(x) / x            # elementwise hot path (VPU + EUP)


def _sinc_right_pallas(bands_p, t_p):
    F_pad, _ = bands_p.shape
    _, N_pad = t_p.shape
    return pl.pallas_call(
        _sinc_right_kernel,
        out_shape=jax.ShapeDtypeStruct((F_pad, N_pad), jnp.float32),
        in_specs=[
            pl.BlockSpec(memory_space=pltpu.MemorySpace.VMEM),   # bands column
            pl.BlockSpec(memory_space=pltpu.MemorySpace.VMEM),   # t_right row
        ],
        out_specs=pl.BlockSpec(memory_space=pltpu.MemorySpace.VMEM),
    )(bands_p, t_p)


def sinc_pallas_batched(bands, t_right):
    """bands: (F,) float; t_right: (N,) float. Returns (F, 2N+1) float32."""
    bands = jnp.asarray(bands, jnp.float32).reshape(-1)
    t_right = jnp.asarray(t_right, jnp.float32).reshape(-1)
    F = bands.shape[0]
    N = t_right.shape[0]

    F_pad = _round_up(max(F, 1), 8)       # fill the 8-sublane dimension
    N_pad = _round_up(max(N, 1), 128)     # lane-dense last dim

    # Pad with 1.0 so padded lanes compute sin(c)/c (finite), never 0/0.
    bands_p = jnp.pad(bands, (0, F_pad - F), constant_values=1.0).reshape(F_pad, 1)
    t_p = jnp.pad(t_right, (0, N_pad - N), constant_values=1.0).reshape(1, N_pad)

    y_right = _sinc_right_pallas(bands_p, t_p)[:F, :N]         # (F, N)

    # Symmetry + center value handled in the wrapper (trivial XLA copies).
    ones = jnp.ones((F, 1), jnp.float32)
    return jnp.concatenate([y_right[:, ::-1], ones, y_right], axis=1)


def sinc_pallas(band, t_right):
    """Matches PyTorch Sinc.forward: band scalar/(1,), t_right (N,) -> (2N+1,)."""
    band = jnp.asarray(band, jnp.float32).reshape(-1)[:1]
    return sinc_pallas_batched(band, t_right)[0]


def sinc_reference(band, t_right):
    band = jnp.asarray(band, jnp.float32).reshape(())
    t_right = jnp.asarray(t_right, jnp.float32).reshape(-1)
    x = 2.0 * math.pi * band * t_right
    y_right = jnp.sin(x) / x
    return jnp.concatenate([y_right[::-1], jnp.ones((1,), jnp.float32), y_right])


if __name__ == "__main__":
    key = jax.random.PRNGKey(0)
    k_band, k_t = jax.random.split(key)

    N = 8      # half length -> output length 2N+1 = 17
    F = 4      # small batch of SincNet filter bands (padded to 8 sublanes)

    # bands: positive scalars (SincNet filter bandwidths); t_right: positive times.
    bands = jax.random.uniform(k_band, (F,), jnp.float32, minval=0.1, maxval=1.0)
    t_right = (jnp.arange(1, N + 1, dtype=jnp.float32) / 16.0
               + 0.01 * jax.random.uniform(k_t, (N,), jnp.float32))

    # Batched call: all filters in a single pallas_call.
    y_batched = sinc_pallas_batched(bands, t_right)
    jax.block_until_ready(y_batched)
    assert y_batched.shape == (F, 2 * N + 1)
    for f in range(F):
        y_ref = sinc_reference(bands[f], t_right)
        assert jnp.allclose(y_batched[f], y_ref, atol=1e-5, rtol=1e-5), (f, y_batched[f], y_ref)

    # Single-band call (original module forward semantics).
    y_single = sinc_pallas(bands[:1], t_right)
    jax.block_until_ready(y_single)
    assert y_single.shape == (2 * N + 1,)
    assert jnp.allclose(y_single, sinc_reference(bands[0], t_right), atol=1e-5, rtol=1e-5)

    print("KERNEL_OK")
</pallas_src>

<mosaic_0001>
module attributes {stable_mosaic.version = 11 : i64} {
  func.func @_sinc_right_kernel(%arg0: memref<8x1xf32, #tpu.memory_space<vmem>>, %arg1: memref<1x128xf32, #tpu.memory_space<vmem>>, %arg2: memref<8x128xf32, #tpu.memory_space<vmem>>) attributes {dimension_semantics = [], scalar_prefetch = 0 : i64, scratch_operands = 0 : i64, tpu.core_type = #tpu.core_type<tc>} {
    %c0 = arith.constant 0 : index
    %c0_0 = arith.constant 0 : index
    %0 = vector.load %arg0[%c0, %c0_0] : memref<8x1xf32, #tpu.memory_space<vmem>>, vector<8x1xf32>
    %c0_1 = arith.constant 0 : index
    %c0_2 = arith.constant 0 : index
    %1 = vector.load %arg1[%c0_1, %c0_2] : memref<1x128xf32, #tpu.memory_space<vmem>>, vector<1x128xf32>
    %cst = arith.constant 6.28318548 : f32
    %2 = vector.broadcast %cst : f32 to vector<8x1xf32>
    %3 = arith.mulf %2, %0 : vector<8x1xf32>
    %4 = vector.broadcast %3 : vector<8x1xf32> to vector<8x128xf32>
    %5 = vector.broadcast %1 : vector<1x128xf32> to vector<8x128xf32>
    %6 = arith.mulf %4, %5 : vector<8x128xf32>
    %7 = math.sin %6 : vector<8x128xf32>
    %8 = arith.divf %7, %6 : vector<8x128xf32>
    %c0_3 = arith.constant 0 : index
    %c0_4 = arith.constant 0 : index
    %9 = vector.load %arg2[%c0_3, %c0_4] : memref<8x128xf32, #tpu.memory_space<vmem>>, vector<8x128xf32>
    tpu.vector_store %arg2[%c0_3, %c0_4], %8 {strides = array<i32>} : memref<8x128xf32, #tpu.memory_space<vmem>>, vector<8x128xf32>,
    return
  }
}

</mosaic_0001>

<bundles_post_ra>
// kernel: tpu_custom_call.1
= control target key start
LH: loop header
LB: loop body
LE: loop exit
PB: predicated region body
PF: predicated region fallthrough
CT: control target
= control target key end

     0   :  { %s248_s0 = inlined_call_operand.vmem [shape: f32[8,1], index: 0, kind: input, shape index: {}]   ;;  %s249_s1 = inlined_call_operand.vmem [shape: f32[1,128], index: 1, kind: input, shape index: {}]   ;;  %s250_s2 = inlined_call_operand.hbm [shape: f32[8,128], index: 2, kind: output, shape index: {}]  }
   0x1   :  { %v12_v0 = vld [vmem:[%s248_s0] sm:$0xff] }
   0x2   :  { %7 = vsyncpa [#allocation3], 0  ;;  %v194_v1 = vmov 0   ;;  %v14_v2 = vmul.f32 6.2831855, %v12_v0  ;;  %s201_s0 = smov [#allocation2]  }
   0x3   :  { %165 = vset.pattern.permute.xlu0 %v194_v1  ;;  %v148_v3 = vld [vmem:[%s249_s1] ss:$0 sm:$0xff]  ;;  %v195_v16 = vmov 683565275   ;;  %v196_v18 = vmov 2475754826  }
   0x4   :  { %17 = vperm.xlu0 %165, %v14_v2   ;;  %v197_v21 = vmov 2131351028   ;;  %v198_v24 = vmov 2102212464   ;;  %v199_v27 = vmov 920167782  }
   0x5   :  { %v200_v30 = vmov 1326507024   ;;  %s140_s1 = sshll.u32 %s201_s0, 4  ;;  %s141_s1 = int_to_ptr.vmem [resolvable:$true] %s140_s1 }
   0x6   :  { %s172_s13 = scalar_lea.vmem %s141_s1, 128  ;;  %p177_p1 = scmp.lt.s32.totalorder %s141_s1, %s141_s1 }
   0x7   :  { %p173_p0 = scmp.ne.s32.totalorder %s141_s1, %s172_s13  ;;  %p178_p2 = scmp.lt.s32.totalorder %s172_s13, %s172_s13 }
   0x9   :  { %p179_p3 = por %p178_p2, %p177_p1 }
   0xb   :  { %p180_p4 = pnand %p179_p3, %p173_p0 }
  0x7f   :  { %v18_v4 = vpop.permute.xlu0 %17 }
  0x80   :  { %v223_v5 = vmul.f32 %v148_v3, %v18_v4 }
  0x82   :  { %v30_v6 = vand.u32 2139095040, %v223_v5  ;;  %v27_v10 = vand.u32 2147483647, %v223_v5  ;;  %vm29_vm7 = vcmp.lt.s32.totalorder %v223_v5, 0  ;;  %vm119_vm12 = vweird.f32 %v223_v5 }
  0x84   :  { %v31_v7 = vshrl.u32 %v30_v6, 23  ;;  %v34_v14 = vand.u32 8388607, %v27_v10  ;;  %vm28_vm8 = vcmp.le.f32.partialorder %v27_v10, 0.7853982 }
  0x86   :  { %v149_v8 = vadd.s32 4294967169, %v31_v7  ;;  %v35_v32 = vor.u32 8388608, %v34_v14 }
  0x88   :  { %v37_v9 = vadd.s32 1, %v149_v8  ;;  %v75_v46 = vshll.u32 %v35_v32, 8 }
  0x8a   :  { %vm38_vm0 = vcmp.gt.s32.totalorder %v37_v9, 0 }
  0x8b   :  { %v39_v11 = vsel %vm38_vm0, %v37_v9, 0 }
  0x8c   :  { %v41_v12 = vand.u32 31, %v39_v11  ;;  %v40_v15 = vshrl.u32 %v39_v11, 5 }
  0x8e   :  { %v42_v13 = vsub.s32 32, %v41_v12  ;;  %v44_v17 = vshll.u32 %v195_v16, %v41_v12  ;;  %v47_v19 = vshll.u32 %v196_v18, %v41_v12  ;;  %v50_v23 = vshll.u32 %v197_v21, %v41_v12 }
  0x8f   :  { %v53_v26 = vshll.u32 %v198_v24, %v41_v12  ;;  %v56_v29 = vshll.u32 %v199_v27, %v41_v12  ;;  %vm59_vm1 = vcmp.lt.s32.totalorder %v40_v15, 1  ;;  %vm62_vm2 = vcmp.lt.s32.totalorder %v40_v15, 4 }
  0x90   :  { %v45_v20 = vshrl.u32 %v196_v18, %v42_v13  ;;  %v48_v22 = vshrl.u32 %v197_v21, %v42_v13  ;;  %v51_v25 = vshrl.u32 %v198_v24, %v42_v13  ;;  %v54_v28 = vshrl.u32 %v199_v27, %v42_v13 }
  0x91   :  { %v57_v31 = vshrl.u32 %v200_v30, %v42_v13  ;;  %v43_v41 = vshrl.u32 %v195_v16, %v42_v13  ;;  %vm61_vm3 = vcmp.lt.s32.totalorder %v40_v15, 3  ;;  %vm60_vm4 = vcmp.lt.s32.totalorder %v40_v15, 2 }
  0x92   :  { %v46_v33 = vor.u32 %v45_v20, %v44_v17  ;;  %v49_v34 = vor.u32 %v48_v22, %v47_v19  ;;  %v52_v35 = vor.u32 %v51_v25, %v50_v23  ;;  %v55_v36 = vor.u32 %v54_v28, %v53_v26 }
  0x93   :  { %v58_v37 = vor.u32 %v57_v31, %v56_v29 }
  0x94   :  { %v64_v38 = vsel %vm62_vm2, %v52_v35, 2102212464  ;;  %v67_v39 = vsel %vm59_vm1, %v46_v33, %v49_v34  ;;  %v71_v40 = vsel %vm59_vm1, %v49_v34, %v52_v35  ;;  %v68_v42 = vsel %vm62_vm2, %v55_v36, 920167782 }
  0x95   :  { %v72_v43 = vsel %vm62_vm2, %v58_v37, 1326507024  ;;  %v69_v44 = vsel %vm61_vm3, %v52_v35, %v68_v42  ;;  %v63_v47 = vsel %vm59_vm1, %v43_v41, %v46_v33  ;;  %v65_v48 = vsel %vm61_vm3, %v49_v34, %v64_v38 }
  0x96   :  { %v73_v45 = vsel %vm61_vm3, %v55_v36, %v72_v43  ;;  %v70_v49 = vsel %vm60_vm4, %v67_v39, %v69_v44  ;;  %v66_v55 = vsel %vm60_vm4, %v63_v47, %v65_v48 }
  0x97   :  { %v74_v50 = vsel %vm60_vm4, %v71_v40, %v73_v45  ;;  %v232_v53 = vmul.u32.u64.low %v75_v46, %v70_v49  ;;  %v233_v54 = vmul.u32.u64.high %v75_v46, %v70_v49, %v232_v53  ;;  %v82_v57 = vmul.u32 %v75_v46, %v66_v55 }
  0x98   :  { %v229_v51 = vmul.u32.u64.low %v75_v46, %v74_v50  ;;  %v230_v52 = vmul.u32.u64.high %v75_v46, %v74_v50, %v229_v51 }
  0x99   :  { %v85_v56 = vadd.s32 1, %v233_v54 }
  0x9a   :  { %vm84_vm5 = vc.u32 %v230_v52, %v232_v53  ;;  %v83_v6 = vadd.s32 %v232_v53, %v230_v52 }
  0x9b   :  { %v86_v58 = vsel %vm84_vm5, %v85_v56, %v233_v54 }
  0x9c   :  { %v87_v59 = vadd.s32 %v86_v58, %v82_v57 }
  0x9e   :  { %v88_v60 = vadd.s32 536870912, %v87_v59 }
  0xa0   :  { %v89_v61 = vshrl.u32 %v88_v60, 30 }
  0xa2   :  { %v90_v62 = vshll.u32 %v89_v61, 30  ;;  %v113_v20 = vsub.s32 4, %v89_v61 }
  0xa4   :  { %v91_v63 = vsub.s32 %v87_v59, %v90_v62  ;;  %v114_v23 = vsel %vm29_vm7, %v113_v20, %v89_v61 }
  0xa5   :  { %v116_v24 = vsel %vm28_vm8, 0, %v114_v23 }
  0xa6   :  { %v93_v0 = vsub.s32 0, %v91_v63  ;;  %v120_v25 = vadd.s32 3, %v116_v24 }
  0xa8   :  { %v150_v1 = vmin.u32 %v93_v0, %v91_v63  ;;  %v121_v26 = vand.u32 3, %v120_v25 }
  0xaa   :  { %v95_v2 = vclz %v150_v1  ;;  %vm126_vm9 = vcmp.eq.s32.totalorder %v121_v26, 2  ;;  %vm123_vm10 = vcmp.eq.s32.totalorder %v121_v26, 0  ;;  %vm122_vm11 = vcmp.lt.s32.totalorder %v121_v26, 2 }
  0xac   :  { %v151_v3 = vadd.s32 4294967294, %v95_v2 }
  0xae   :  { %vm152_vm6 = vcmp.lt.s32.totalorder %v151_v3, 0 }
  0xaf   :  { %v98_v4 = vsel %vm152_vm6, 0, %v151_v3 }
  0xb0   :  { %v99_v7 = vsub.s32 32, %v98_v4  ;;  %v103_v8 = vsub.s32 4294967266, %v98_v4  ;;  %v100_v9 = vshll.u32 %v91_v63, %v98_v4 }
  0xb2   :  { %v101_v11 = vshrl.u32 %v83_v6, %v99_v7  ;;  %v104_v12 = vadd.s32 127, %v103_v8 }
  0xb4   :  { %v102_v13 = vor.u32 %v101_v11, %v100_v9  ;;  %v105_v14 = vshll.u32 %v104_v12, 23 }
  0xb6   :  { %v106_v15 = vor.u32 4788187, %v105_v14  ;;  %v109_v17 = vcvt.s32.f32 %v102_v13 }
  0xb8   :  { %v107_v16 = vand.u32 2147483647, %v106_v15 }
  0xba   :  { %v110_v18 = vmul.f32 %v109_v17, %v107_v16 }
  0xbc   :  { %v111_v19 = vxor.u32 2147483648, %v110_v18 }
  0xbe   :  { %v112_v21 = vsel %vm29_vm7, %v111_v19, %v110_v18 }
  0xbf   :  { %v115_v22 = vsel %vm28_vm8, %v223_v5, %v112_v21 }
  0xc0   :  { %166 = vcosq.f32 %v115_v22 }
  0xc1   :  { %168 = vsinq.f32 %v115_v22 }
  0xc2   :  { %170 = vrcp.f32 %v223_v5 }
  0xcd   :  { %v167_v27 = vpop.eup %166 }
  0xce   :  { %v169_v28 = vpop.eup %168  ;;  %v127_v29 = vxor.u32 2147483648, %v167_v27 }
  0xcf   :  { %v124_v30 = vxor.u32 2147483648, %v169_v28  ;;  %v171_v33 = vpop.eup %170 }
  0xd0   :  { %v128_v31 = vsel %vm126_vm9, %v127_v29, %v169_v28 }
  0xd1   :  { %v125_v10 = vsel %vm123_vm10, %v167_v27, %v124_v30 }
  0xd2   :  { %v129_v32 = vsel %vm122_vm11, %v125_v10, %v128_v31 }
  0xd3   :  { %v130_v34 = vsel %vm119_vm12, nan, %v129_v32 }
  0xd4   :  { %v132_v35 = vmul.f32 %v171_v33, %v130_v34 }
  0xd6   :  { %133 = vst [vmem:[#allocation2] sm:$0xff] %v132_v35 }
  0xd7   :  { %183 = shalt.err (!%p180_p4)
}
  0xd8   :  { %143 = dma.vmem_to_hbm [thread:$0]  %s141_s1, 128, %s250_s2, [#allocation3]  }
  0xd9   :  { %192 = dma.done.wait [#allocation3], 128  }
  0xda   :  { %193 = vsyncadd [#allocation3], 4294967168 }
  0xdb   :  { %147 = vsyncpa [#allocation3], 1 }

</bundles_post_ra>
